<compile_context>
chip_gen: v6e
topology: v6e:2x2x1
jax: 0.10.0
libtpu: 0.0.40
codegen_flags: <defaults>
</compile_context>

<pallas_src>
import functools

import jax
import jax.numpy as jnp
from jax import lax
from jax.experimental import pallas as pl
from jax.experimental.pallas import tpu as pltpu

LANES = 128
# ~6.8 MiB of f32 input per grid step (13 planes x 1024 rows x 128 lanes).
DEFAULT_TARGET_STEP_BYTES = 13 * 1024 * LANES * 4


def _detection_loss_kernel(sp_ref, st_ref, gp_ref, gt_ref, ap_ref, at_ref, m_ref,
                           acc_ref, *, lambda_angle, smooth, R, C, tr, acc_r,
                           bt, tph, needs_tail):
    h = pl.program_id(1)            # half of the row-reduction range
    r = pl.program_id(2)            # row-tile index within the half (sequential)

    @pl.when(r == 0)
    def _init():
        acc_ref[...] = jnp.zeros_like(acc_ref)

    f32 = jnp.float32
    p = sp_ref[...].astype(f32)     # (bt, tr, C) score_map_pred
    t = st_ref[...].astype(f32)     # score_map_true
    m = m_ref[...].astype(f32)      # training_mask
    ang_p = ap_ref[...].astype(f32)
    ang_t = at_ref[...].astype(f32)

    # --- cls loss: F.binary_cross_entropy(reduction='none'); PyTorch clamps
    #     the log terms at -100.  (Assumes p in [0, 1], like PyTorch.)
    log_p = jnp.maximum(jnp.log(p), -100.0)
    log_1mp = jnp.maximum(jnp.log(1.0 - p), -100.0)
    bce = -(t * log_p + (1.0 - t) * log_1mp)

    # --- IoU loss (channel order t, b, l, r) ---------------------------------
    geo_p = gp_ref[...].astype(f32)     # (bt, 4, tr, C)
    geo_t = gt_ref[...].astype(f32)
    t_p, b_p, l_p, r_p = geo_p[:, 0], geo_p[:, 1], geo_p[:, 2], geo_p[:, 3]
    t_t, b_t, l_t, r_t = geo_t[:, 0], geo_t[:, 1], geo_t[:, 2], geo_t[:, 3]

    area_t = (t_t + b_t) * (l_t + r_t)
    area_p = (t_p + b_p) * (l_p + r_p)
    h_i = jnp.minimum(t_t, t_p) + jnp.minimum(b_t, b_p)
    w_i = jnp.minimum(l_t, l_p) + jnp.minimum(r_t, r_p)
    a_i = h_i * w_i
    iou = (a_i + smooth) / (area_t + area_p - a_i + smooth)

    # --- reg loss = IoU log-loss + angle cosine loss -------------------------
    l_reg = -jnp.log(iou) + lambda_angle * (1.0 - jnp.cos(ang_p - ang_t))

    cls_c = bce * m
    reg_c = l_reg * m

    def fold(x):                    # (bt, tr, C) -> (acc_r, C)
        x = x[0] if bt == 1 else jnp.sum(x, axis=0)
        if tr != acc_r:
            x = x.reshape(tr // acc_r, acc_r, C).sum(axis=0)
        return x

    def accumulate(c, g, mm):
        acc_ref[0, 0, :, :] = acc_ref[0, 0, :, :] + fold(c)
        acc_ref[0, 1, :, :] = acc_ref[0, 1, :, :] + fold(g)
        acc_ref[0, 2, :, :] = acc_ref[0, 2, :, :] + fold(mm)

    if needs_tail:
        intended = h * tph + r                  # un-clamped row-tile index
        is_tail = (intended + 1) * tr > R       # tile extends past the last row

        @pl.when(is_tail)
        def _masked():
            # Only the ragged last tile (and, if present, the fully-clamped
            # duplicate tile of the second half) take this path.  jnp.where is
            # a select, so unspecified Pallas block padding cannot leak NaNs.
            row_ids = lax.broadcasted_iota(jnp.int32, (bt, tr, C), 1)
            valid = (row_ids + intended * tr) < R
            zero = jnp.zeros((), f32)
            accumulate(jnp.where(valid, cls_c, zero),
                       jnp.where(valid, reg_c, zero),
                       jnp.where(valid, m, zero))

        @pl.when(jnp.logical_not(is_tail))
        def _fast():
            accumulate(cls_c, reg_c, m)
    else:
        accumulate(cls_c, reg_c, m)


def _largest_divisor_leq(n, cap):
    cap = max(1, min(n, cap))
    for d in range(cap, 0, -1):
        if n % d == 0:
            return d
    return 1


def detection_loss(score_map_pred, geo_map_pred, angle_map_pred,
                   score_map_true, geo_map_true, angle_map_true,
                   training_mask, *, lambda_reg=1.0, lambda_angle=10.0,
                   target_step_bytes=DEFAULT_TARGET_STEP_BYTES):
    B, _, H, W = score_map_pred.shape
    hw = H * W

    # Copy-less per-plane 2-D view (R, C): lane-dense when possible, otherwise
    # the native (H, W) view (no HBM padding pass in either case).
    if hw % LANES == 0:
        R, C = hw // LANES, LANES
    else:
        R, C = H, W

    sp = score_map_pred.reshape(B, R, C)
    st = score_map_true.reshape(B, R, C)
    m = training_mask.reshape(B, R, C)
    ap = angle_map_pred.reshape(B, R, C)
    at = angle_map_true.reshape(B, R, C)
    gp = geo_map_pred.reshape(B, 4, R, C)
    gt = geo_map_true.reshape(B, 4, R, C)

    # ---------------- tile / batch-block selection ----------------
    c_pad = -(-C // LANES) * LANES          # lanes occupied in VMEM per row
    bytes_per_row = c_pad * (sp.dtype.itemsize + st.dtype.itemsize
                             + m.dtype.itemsize + ap.dtype.itemsize
                             + at.dtype.itemsize
                             + 4 * gp.dtype.itemsize + 4 * gt.dtype.itemsize)
    target_rows = max(8, int(target_step_bytes) // bytes_per_row)

    if R <= target_rows:
        tr = R                                           # full rows per step
        bt = _largest_divisor_leq(B, target_rows // R)   # pack images per step
    else:
        bt = 1
        tr = (target_rows // 32) * 32 if target_rows >= 32 \
            else max(8, (target_rows // 8) * 8)
    n_row_tiles = -(-R // tr)
    nbb = B // bt
    # Fold rows into an 8-row accumulator only on the proven lane-aligned path.
    acc_r = 8 if (tr % 8 == 0 and C % LANES == 0) else tr

    # Split the sequential row range in two halves so v7x's second TensorCore
    # has parallel work when the batch axis alone cannot provide it.
    nh = 2 if (nbb == 1 and n_row_tiles >= 4) else 1
    tph = -(-n_row_tiles // nh)
    needs_tail = (R % tr != 0) or (nh * tph != n_row_tiles)

    def row_idx(bb, h, r):
        return (bb, jnp.minimum(h * tph + r, n_row_tiles - 1), 0)

    def geo_idx(bb, h, r):
        return (bb, 0, jnp.minimum(h * tph + r, n_row_tiles - 1), 0)

    def acc_idx(bb, h, r):
        return (bb * nh + h, 0, 0, 0)

    row_spec = pl.BlockSpec((bt, tr, C), row_idx)
    geo_spec = pl.BlockSpec((bt, 4, tr, C), geo_idx)
    acc_spec = pl.BlockSpec((1, 3, acc_r, C), acc_idx)

    kernel = functools.partial(
        _detection_loss_kernel,
        lambda_angle=float(lambda_angle), smooth=1.0,
        R=R, C=C, tr=tr, acc_r=acc_r, bt=bt, tph=tph, needs_tail=needs_tail)

    in_bytes = sum(int(a.size) * a.dtype.itemsize
                   for a in (sp, st, gp, gt, ap, at, m))
    out_bytes = nbb * nh * 3 * acc_r * C * 4
    cost = pl.CostEstimate(flops=40 * B * hw, transcendentals=5 * B * hw,
                           bytes_accessed=int(in_bytes + out_bytes))

    acc = pl.pallas_call(
        kernel,
        out_shape=jax.ShapeDtypeStruct((nbb * nh, 3, acc_r, C), jnp.float32),
        grid=(nbb, nh, tph),
        in_specs=[row_spec, row_spec, geo_spec, geo_spec,
                  row_spec, row_spec, row_spec],
        out_specs=acc_spec,
        compiler_params=pltpu.CompilerParams(
            dimension_semantics=("parallel", "parallel", "arbitrary"),
            vmem_limit_bytes=32 * 1024 * 1024),
        cost_estimate=cost,
    )(sp, st, gp, gt, ap, at, m)

    sums = jnp.sum(acc, axis=(0, 2, 3))   # (3,): [cls_sum, reg_sum, n_positive]
    num_positive_samples = sums[2]        # unguarded division, same as PyTorch
    L_cls = sums[0] / num_positive_samples
    L_reg = sums[1] / num_positive_samples
    L_detect = L_cls + lambda_reg * L_reg
    return {'cls_loss': L_cls, 'reg_loss': L_reg, 'detect_loss': L_detect}


def _reference(sp, gp, ap, st, gt, at, m, lambda_reg=1.0, lambda_angle=10.0):
    """Pure-JAX reference mirroring the PyTorch forward (for sanity check)."""
    bce = -(st * jnp.maximum(jnp.log(sp), -100.0)
            + (1.0 - st) * jnp.maximum(jnp.log(1.0 - sp), -100.0))
    t_t, b_t, l_t, r_t = jnp.split(gt, 4, axis=1)
    t_p, b_p, l_p, r_p = jnp.split(gp, 4, axis=1)
    area_t = (t_t + b_t) * (l_t + r_t)
    area_p = (t_p + b_p) * (l_p + r_p)
    h_i = jnp.minimum(t_t, t_p) + jnp.minimum(b_t, b_p)
    w_i = jnp.minimum(l_t, l_p) + jnp.minimum(r_t, r_p)
    a_i = h_i * w_i
    iou = (a_i + 1.0) / (area_t + area_p - a_i + 1.0)
    l_reg_map = -jnp.log(iou) + lambda_angle * (1.0 - jnp.cos(ap - at))
    npos = jnp.sum(m)
    L_cls = jnp.sum(bce * m) / npos
    L_reg = jnp.sum(l_reg_map * m) / npos
    return {'cls_loss': L_cls, 'reg_loss': L_reg,
            'detect_loss': L_cls + lambda_reg * L_reg}


def _make_inputs(B, H, W, key):
    k = jax.random.split(key, 7)
    score_pred = jax.nn.sigmoid(jax.random.normal(k[0], (B, 1, H, W), jnp.float32))
    score_true = (jax.random.uniform(k[1], (B, 1, H, W)) > 0.5).astype(jnp.float32)
    geo_pred = jax.random.uniform(k[2], (B, 4, H, W), jnp.float32, 0.5, 10.0)
    geo_true = jax.random.uniform(k[3], (B, 4, H, W), jnp.float32, 0.5, 10.0)
    angle_pred = jax.random.uniform(k[4], (B, 1, H, W), jnp.float32, -0.5, 0.5)
    angle_true = jax.random.uniform(k[5], (B, 1, H, W), jnp.float32, -0.5, 0.5)
    mask = (jax.random.uniform(k[6], (B, 1, H, W)) > 0.3).astype(jnp.float32)
    return score_pred, geo_pred, angle_pred, score_true, geo_true, angle_true, mask


if __name__ == "__main__":
    key = jax.random.PRNGKey(0)
    k1, k2, k3, k4 = jax.random.split(key, 4)

    def check(args, tol, **kw):
        out = jax.block_until_ready(detection_loss(*args, **kw))
        ref = _reference(*args)
        for name in ('cls_loss', 'reg_loss', 'detect_loss'):
            assert jnp.allclose(out[name], ref[name], rtol=tol, atol=tol), (
                name, out[name], ref[name])

    # 1) Small, lane-aligned (H*W % 128 == 0): single step, batch-blocked (Bt=2).
    check(_make_inputs(2, 16, 16, k1), 1e-5)

    # 2) H*W not a multiple of 128: native (H, W) view, no HBM padding copy.
    check(_make_inputs(1, 264, 264, k2), 5e-4)

    # 3) Tiny per-step budget on a small map: exercises multi-tile accumulation,
    #    the two-half reduction split, the ragged last tile mask and the
    #    fully-clamped duplicate tile.
    check(_make_inputs(1, 96, 96, k3), 5e-4,
          target_step_bytes=13 * 16 * LANES * 4)

    # 4) Odd spatial dims with batch blocking (Bt=3) on the (H, W) view.
    check(_make_inputs(3, 18, 18, k4), 1e-5)

    print("KERNEL_OK")
</pallas_src>

<mosaic_0001>
module attributes {stable_mosaic.version = 11 : i64} {
  func.func @_detection_loss_kernel(%arg0: i32, %arg1: i32, %arg2: i32, %arg3: memref<2x2x128xf32, #tpu.memory_space<vmem>>, %arg4: memref<2x2x128xf32, #tpu.memory_space<vmem>>, %arg5: memref<2x4x2x128xf32, #tpu.memory_space<vmem>>, %arg6: memref<2x4x2x128xf32, #tpu.memory_space<vmem>>, %arg7: memref<2x2x128xf32, #tpu.memory_space<vmem>>, %arg8: memref<2x2x128xf32, #tpu.memory_space<vmem>>, %arg9: memref<2x2x128xf32, #tpu.memory_space<vmem>>, %arg10: memref<1x3x2x128xf32, #tpu.memory_space<vmem>>) attributes {dimension_semantics = [#tpu.dimension_semantics<parallel>, #tpu.dimension_semantics<parallel>, #tpu.dimension_semantics<arbitrary>], iteration_bounds = array<i64: 1, 1, 1>, scalar_prefetch = 0 : i64, scratch_operands = 0 : i64, tpu.core_type = #tpu.core_type<tc>, window_params = [{transform_indices = @transform_0, window_bounds = array<i64: 2, 2, 128>}, {transform_indices = @transform_1, window_bounds = array<i64: 2, 2, 128>}, {transform_indices = @transform_2, window_bounds = array<i64: 2, 4, 2, 128>}, {transform_indices = @transform_3, window_bounds = array<i64: 2, 4, 2, 128>}, {transform_indices = @transform_4, window_bounds = array<i64: 2, 2, 128>}, {transform_indices = @transform_5, window_bounds = array<i64: 2, 2, 128>}, {transform_indices = @transform_6, window_bounds = array<i64: 2, 2, 128>}, {transform_indices = @transform_7, window_bounds = array<i64: 1, 3, 2, 128>}]} {
    %c0_i32 = arith.constant 0 : i32
    %0 = arith.cmpi eq, %arg2, %c0_i32 : i32
    %1 = arith.extui %0 : i1 to i32
    %c0_i32_0 = arith.constant 0 : i32
    %2 = arith.cmpi ne, %1, %c0_i32_0 : i32
    scf.if %2 {
      %cst_57 = arith.constant 0.000000e+00 : f32
      %94 = vector.broadcast %cst_57 : f32 to vector<1x3x2x128xf32>
      %c0_58 = arith.constant 0 : index
      %c0_59 = arith.constant 0 : index
      %c0_60 = arith.constant 0 : index
      %c0_61 = arith.constant 0 : index
      %95 = vector.load %arg10[%c0_58, %c0_59, %c0_60, %c0_61] : memref<1x3x2x128xf32, #tpu.memory_space<vmem>>, vector<1x3x2x128xf32>
      tpu.vector_store %arg10[%c0_58, %c0_59, %c0_60, %c0_61], %94 {strides = array<i32>} : memref<1x3x2x128xf32, #tpu.memory_space<vmem>>, vector<1x3x2x128xf32>,
    } else {
    }
    %c0 = arith.constant 0 : index
    %c0_1 = arith.constant 0 : index
    %c0_2 = arith.constant 0 : index
    %3 = vector.load %arg3[%c0, %c0_1, %c0_2] : memref<2x2x128xf32, #tpu.memory_space<vmem>>, vector<2x2x128xf32>
    %c0_3 = arith.constant 0 : index
    %c0_4 = arith.constant 0 : index
    %c0_5 = arith.constant 0 : index
    %4 = vector.load %arg4[%c0_3, %c0_4, %c0_5] : memref<2x2x128xf32, #tpu.memory_space<vmem>>, vector<2x2x128xf32>
    %c0_6 = arith.constant 0 : index
    %c0_7 = arith.constant 0 : index
    %c0_8 = arith.constant 0 : index
    %5 = vector.load %arg9[%c0_6, %c0_7, %c0_8] : memref<2x2x128xf32, #tpu.memory_space<vmem>>, vector<2x2x128xf32>
    %c0_9 = arith.constant 0 : index
    %c0_10 = arith.constant 0 : index
    %c0_11 = arith.constant 0 : index
    %6 = vector.load %arg7[%c0_9, %c0_10, %c0_11] : memref<2x2x128xf32, #tpu.memory_space<vmem>>, vector<2x2x128xf32>
    %c0_12 = arith.constant 0 : index
    %c0_13 = arith.constant 0 : index
    %c0_14 = arith.constant 0 : index
    %7 = vector.load %arg8[%c0_12, %c0_13, %c0_14] : memref<2x2x128xf32, #tpu.memory_space<vmem>>, vector<2x2x128xf32>
    %8 = math.log %3 : vector<2x2x128xf32>
    %cst = arith.constant -1.000000e+02 : f32
    %9 = vector.broadcast %cst : f32 to vector<2x2x128xf32>
    %10 = arith.maximumf %8, %9 : vector<2x2x128xf32>
    %cst_15 = arith.constant 1.000000e+00 : f32
    %11 = vector.broadcast %cst_15 : f32 to vector<2x2x128xf32>
    %12 = arith.subf %11, %3 : vector<2x2x128xf32>
    %13 = math.log %12 : vector<2x2x128xf32>
    %cst_16 = arith.constant -1.000000e+02 : f32
    %14 = vector.broadcast %cst_16 : f32 to vector<2x2x128xf32>
    %15 = arith.maximumf %13, %14 : vector<2x2x128xf32>
    %16 = arith.mulf %4, %10 : vector<2x2x128xf32>
    %cst_17 = arith.constant 1.000000e+00 : f32
    %17 = vector.broadcast %cst_17 : f32 to vector<2x2x128xf32>
    %18 = arith.subf %17, %4 : vector<2x2x128xf32>
    %19 = arith.mulf %18, %15 : vector<2x2x128xf32>
    %20 = arith.addf %16, %19 : vector<2x2x128xf32>
    %cst_18 = arith.constant 0.000000e+00 : f32
    %21 = vector.broadcast %cst_18 : f32 to vector<2x2x128xf32>
    %22 = arith.subf %21, %20 : vector<2x2x128xf32>
    %c0_19 = arith.constant 0 : index
    %c0_20 = arith.constant 0 : index
    %c0_21 = arith.constant 0 : index
    %c0_22 = arith.constant 0 : index
    %23 = vector.load %arg5[%c0_19, %c0_20, %c0_21, %c0_22] : memref<2x4x2x128xf32, #tpu.memory_space<vmem>>, vector<2x4x2x128xf32>
    %c0_23 = arith.constant 0 : index
    %c0_24 = arith.constant 0 : index
    %c0_25 = arith.constant 0 : index
    %c0_26 = arith.constant 0 : index
    %24 = vector.load %arg6[%c0_23, %c0_24, %c0_25, %c0_26] : memref<2x4x2x128xf32, #tpu.memory_space<vmem>>, vector<2x4x2x128xf32>
    %25 = vector.extract_strided_slice %23 {offsets = [0, 0, 0, 0], sizes = [2, 1, 2, 128], strides = [1, 1, 1, 1]} : vector<2x4x2x128xf32> to vector<2x1x2x128xf32>
    %26 = vector.shape_cast %25 : vector<2x1x2x128xf32> to vector<2x2x128xf32>
    %27 = vector.extract_strided_slice %23 {offsets = [0, 1, 0, 0], sizes = [2, 1, 2, 128], strides = [1, 1, 1, 1]} : vector<2x4x2x128xf32> to vector<2x1x2x128xf32>
    %28 = vector.shape_cast %27 : vector<2x1x2x128xf32> to vector<2x2x128xf32>
    %29 = vector.extract_strided_slice %23 {offsets = [0, 2, 0, 0], sizes = [2, 1, 2, 128], strides = [1, 1, 1, 1]} : vector<2x4x2x128xf32> to vector<2x1x2x128xf32>
    %30 = vector.shape_cast %29 : vector<2x1x2x128xf32> to vector<2x2x128xf32>
    %31 = vector.extract_strided_slice %23 {offsets = [0, 3, 0, 0], sizes = [2, 1, 2, 128], strides = [1, 1, 1, 1]} : vector<2x4x2x128xf32> to vector<2x1x2x128xf32>
    %32 = vector.shape_cast %31 : vector<2x1x2x128xf32> to vector<2x2x128xf32>
    %33 = vector.extract_strided_slice %24 {offsets = [0, 0, 0, 0], sizes = [2, 1, 2, 128], strides = [1, 1, 1, 1]} : vector<2x4x2x128xf32> to vector<2x1x2x128xf32>
    %34 = vector.shape_cast %33 : vector<2x1x2x128xf32> to vector<2x2x128xf32>
    %35 = vector.extract_strided_slice %24 {offsets = [0, 1, 0, 0], sizes = [2, 1, 2, 128], strides = [1, 1, 1, 1]} : vector<2x4x2x128xf32> to vector<2x1x2x128xf32>
    %36 = vector.shape_cast %35 : vector<2x1x2x128xf32> to vector<2x2x128xf32>
    %37 = vector.extract_strided_slice %24 {offsets = [0, 2, 0, 0], sizes = [2, 1, 2, 128], strides = [1, 1, 1, 1]} : vector<2x4x2x128xf32> to vector<2x1x2x128xf32>
    %38 = vector.shape_cast %37 : vector<2x1x2x128xf32> to vector<2x2x128xf32>
    %39 = vector.extract_strided_slice %24 {offsets = [0, 3, 0, 0], sizes = [2, 1, 2, 128], strides = [1, 1, 1, 1]} : vector<2x4x2x128xf32> to vector<2x1x2x128xf32>
    %40 = vector.shape_cast %39 : vector<2x1x2x128xf32> to vector<2x2x128xf32>
    %41 = arith.addf %34, %36 : vector<2x2x128xf32>
    %42 = arith.addf %38, %40 : vector<2x2x128xf32>
    %43 = arith.mulf %41, %42 : vector<2x2x128xf32>
    %44 = arith.addf %26, %28 : vector<2x2x128xf32>
    %45 = arith.addf %30, %32 : vector<2x2x128xf32>
    %46 = arith.mulf %44, %45 : vector<2x2x128xf32>
    %47 = arith.minimumf %34, %26 : vector<2x2x128xf32>
    %48 = arith.minimumf %36, %28 : vector<2x2x128xf32>
    %49 = arith.addf %47, %48 : vector<2x2x128xf32>
    %50 = arith.minimumf %38, %30 : vector<2x2x128xf32>
    %51 = arith.minimumf %40, %32 : vector<2x2x128xf32>
    %52 = arith.addf %50, %51 : vector<2x2x128xf32>
    %53 = arith.mulf %49, %52 : vector<2x2x128xf32>
    %cst_27 = arith.constant 1.000000e+00 : f32
    %54 = vector.broadcast %cst_27 : f32 to vector<2x2x128xf32>
    %55 = arith.addf %53, %54 : vector<2x2x128xf32>
    %56 = arith.addf %43, %46 : vector<2x2x128xf32>
    %57 = arith.subf %56, %53 : vector<2x2x128xf32>
    %cst_28 = arith.constant 1.000000e+00 : f32
    %58 = vector.broadcast %cst_28 : f32 to vector<2x2x128xf32>
    %59 = arith.addf %57, %58 : vector<2x2x128xf32>
    %60 = arith.divf %55, %59 : vector<2x2x128xf32>
    %61 = math.log %60 : vector<2x2x128xf32>
    %cst_29 = arith.constant 0.000000e+00 : f32
    %62 = vector.broadcast %cst_29 : f32 to vector<2x2x128xf32>
    %63 = arith.subf %62, %61 : vector<2x2x128xf32>
    %64 = arith.subf %6, %7 : vector<2x2x128xf32>
    %65 = math.cos %64 : vector<2x2x128xf32>
    %cst_30 = arith.constant 1.000000e+00 : f32
    %66 = vector.broadcast %cst_30 : f32 to vector<2x2x128xf32>
    %67 = arith.subf %66, %65 : vector<2x2x128xf32>
    %cst_31 = arith.constant 1.000000e+01 : f32
    %68 = vector.broadcast %cst_31 : f32 to vector<2x2x128xf32>
    %69 = arith.mulf %68, %67 : vector<2x2x128xf32>
    %70 = arith.addf %63, %69 : vector<2x2x128xf32>
    %71 = arith.mulf %22, %5 : vector<2x2x128xf32>
    %72 = arith.mulf %70, %5 : vector<2x2x128xf32>
    %c0_32 = arith.constant 0 : index
    %c0_33 = arith.constant 0 : index
    %c0_34 = arith.constant 0 : index
    %c0_35 = arith.constant 0 : index
    %73 = vector.load %arg10[%c0_32, %c0_33, %c0_34, %c0_35] : memref<1x3x2x128xf32, #tpu.memory_space<vmem>>, vector<1x1x2x128xf32>
    %74 = vector.shape_cast %73 : vector<1x1x2x128xf32> to vector<2x128xf32>
    %cst_36 = arith.constant dense<0.000000e+00> : vector<2x128xf32>
    %75 = vector.multi_reduction <add>, %71, %cst_36 [0] : vector<2x2x128xf32> to vector<2x128xf32>
    %76 = arith.addf %74, %75 : vector<2x128xf32>
    %c0_37 = arith.constant 0 : index
    %c0_38 = arith.constant 0 : index
    %c0_39 = arith.constant 0 : index
    %c0_40 = arith.constant 0 : index
    %77 = vector.load %arg10[%c0_37, %c0_38, %c0_39, %c0_40] : memref<1x3x2x128xf32, #tpu.memory_space<vmem>>, vector<1x1x2x128xf32>
    %78 = vector.shape_cast %77 : vector<1x1x2x128xf32> to vector<2x128xf32>
    %79 = vector.shape_cast %76 : vector<2x128xf32> to vector<1x1x2x128xf32>
    tpu.vector_store %arg10[%c0_37, %c0_38, %c0_39, %c0_40], %79 {strides = array<i32>} : memref<1x3x2x128xf32, #tpu.memory_space<vmem>>, vector<1x1x2x128xf32>,
    %c0_41 = arith.constant 0 : index
    %c1 = arith.constant 1 : index
    %c0_42 = arith.constant 0 : index
    %c0_43 = arith.constant 0 : index
    %80 = vector.load %arg10[%c0_41, %c1, %c0_42, %c0_43] : memref<1x3x2x128xf32, #tpu.memory_space<vmem>>, vector<1x1x2x128xf32>
    %81 = vector.shape_cast %80 : vector<1x1x2x128xf32> to vector<2x128xf32>
    %cst_44 = arith.constant dense<0.000000e+00> : vector<2x128xf32>
    %82 = vector.multi_reduction <add>, %72, %cst_44 [0] : vector<2x2x128xf32> to vector<2x128xf32>
    %83 = arith.addf %81, %82 : vector<2x128xf32>
    %c0_45 = arith.constant 0 : index
    %c1_46 = arith.constant 1 : index
    %c0_47 = arith.constant 0 : index
    %c0_48 = arith.constant 0 : index
    %84 = vector.load %arg10[%c0_45, %c1_46, %c0_47, %c0_48] : memref<1x3x2x128xf32, #tpu.memory_space<vmem>>, vector<1x1x2x128xf32>
    %85 = vector.shape_cast %84 : vector<1x1x2x128xf32> to vector<2x128xf32>
    %86 = vector.shape_cast %83 : vector<2x128xf32> to vector<1x1x2x128xf32>
    tpu.vector_store %arg10[%c0_45, %c1_46, %c0_47, %c0_48], %86 {strides = array<i32>} : memref<1x3x2x128xf32, #tpu.memory_space<vmem>>, vector<1x1x2x128xf32>,
    %c0_49 = arith.constant 0 : index
    %c2 = arith.constant 2 : index
    %c0_50 = arith.constant 0 : index
    %c0_51 = arith.constant 0 : index
    %87 = vector.load %arg10[%c0_49, %c2, %c0_50, %c0_51] : memref<1x3x2x128xf32, #tpu.memory_space<vmem>>, vector<1x1x2x128xf32>
    %88 = vector.shape_cast %87 : vector<1x1x2x128xf32> to vector<2x128xf32>
    %cst_52 = arith.constant dense<0.000000e+00> : vector<2x128xf32>
    %89 = vector.multi_reduction <add>, %5, %cst_52 [0] : vector<2x2x128xf32> to vector<2x128xf32>
    %90 = arith.addf %88, %89 : vector<2x128xf32>
    %c0_53 = arith.constant 0 : index
    %c2_54 = arith.constant 2 : index
    %c0_55 = arith.constant 0 : index
    %c0_56 = arith.constant 0 : index
    %91 = vector.load %arg10[%c0_53, %c2_54, %c0_55, %c0_56] : memref<1x3x2x128xf32, #tpu.memory_space<vmem>>, vector<1x1x2x128xf32>
    %92 = vector.shape_cast %91 : vector<1x1x2x128xf32> to vector<2x128xf32>
    %93 = vector.shape_cast %90 : vector<2x128xf32> to vector<1x1x2x128xf32>
    tpu.vector_store %arg10[%c0_53, %c2_54, %c0_55, %c0_56], %93 {strides = array<i32>} : memref<1x3x2x128xf32, #tpu.memory_space<vmem>>, vector<1x1x2x128xf32>,
    return
  }
  func.func @transform_0(%arg0: i32, %arg1: i32, %arg2: i32) -> (i32, i32, i32) {
    %c1_i32 = arith.constant 1 : i32
    %0 = arith.muli %arg1, %c1_i32 : i32
    %1 = arith.addi %0, %arg2 : i32
    %c0_i32 = arith.constant 0 : i32
    %2 = arith.minsi %1, %c0_i32 : i32
    %c0_i32_0 = arith.constant 0 : i32
    %c0_i32_1 = arith.constant 0 : i32
    return %arg0, %2, %c0_i32_0 : i32, i32, i32
  }
  func.func @transform_1(%arg0: i32, %arg1: i32, %arg2: i32) -> (i32, i32, i32) {
    %c1_i32 = arith.constant 1 : i32
    %0 = arith.muli %arg1, %c1_i32 : i32
    %1 = arith.addi %0, %arg2 : i32
    %c0_i32 = arith.constant 0 : i32
    %2 = arith.minsi %1, %c0_i32 : i32
    %c0_i32_0 = arith.constant 0 : i32
    %c0_i32_1 = arith.constant 0 : i32
    return %arg0, %2, %c0_i32_0 : i32, i32, i32
  }
  func.func @transform_2(%arg0: i32, %arg1: i32, %arg2: i32) -> (i32, i32, i32, i32) {
    %c1_i32 = arith.constant 1 : i32
    %0 = arith.muli %arg1, %c1_i32 : i32
    %1 = arith.addi %0, %arg2 : i32
    %c0_i32 = arith.constant 0 : i32
    %2 = arith.minsi %1, %c0_i32 : i32
    %c0_i32_0 = arith.constant 0 : i32
    %c0_i32_1 = arith.constant 0 : i32
    %c0_i32_2 = arith.constant 0 : i32
    return %arg0, %c0_i32_0, %2, %c0_i32_1 : i32, i32, i32, i32
  }
  func.func @transform_3(%arg0: i32, %arg1: i32, %arg2: i32) -> (i32, i32, i32, i32) {
    %c1_i32 = arith.constant 1 : i32
    %0 = arith.muli %arg1, %c1_i32 : i32
    %1 = arith.addi %0, %arg2 : i32
    %c0_i32 = arith.constant 0 : i32
    %2 = arith.minsi %1, %c0_i32 : i32
    %c0_i32_0 = arith.constant 0 : i32
    %c0_i32_1 = arith.constant 0 : i32
    %c0_i32_2 = arith.constant 0 : i32
    return %arg0, %c0_i32_0, %2, %c0_i32_1 : i32, i32, i32, i32
  }
  func.func @transform_4(%arg0: i32, %arg1: i32, %arg2: i32) -> (i32, i32, i32) {
    %c1_i32 = arith.constant 1 : i32
    %0 = arith.muli %arg1, %c1_i32 : i32
    %1 = arith.addi %0, %arg2 : i32
    %c0_i32 = arith.constant 0 : i32
    %2 = arith.minsi %1, %c0_i32 : i32
    %c0_i32_0 = arith.constant 0 : i32
    %c0_i32_1 = arith.constant 0 : i32
    return %arg0, %2, %c0_i32_0 : i32, i32, i32
  }
  func.func @transform_5(%arg0: i32, %arg1: i32, %arg2: i32) -> (i32, i32, i32) {
    %c1_i32 = arith.constant 1 : i32
    %0 = arith.muli %arg1, %c1_i32 : i32
    %1 = arith.addi %0, %arg2 : i32
    %c0_i32 = arith.constant 0 : i32
    %2 = arith.minsi %1, %c0_i32 : i32
    %c0_i32_0 = arith.constant 0 : i32
    %c0_i32_1 = arith.constant 0 : i32
    return %arg0, %2, %c0_i32_0 : i32, i32, i32
  }
  func.func @transform_6(%arg0: i32, %arg1: i32, %arg2: i32) -> (i32, i32, i32) {
    %c1_i32 = arith.constant 1 : i32
    %0 = arith.muli %arg1, %c1_i32 : i32
    %1 = arith.addi %0, %arg2 : i32
    %c0_i32 = arith.constant 0 : i32
    %2 = arith.minsi %1, %c0_i32 : i32
    %c0_i32_0 = arith.constant 0 : i32
    %c0_i32_1 = arith.constant 0 : i32
    return %arg0, %2, %c0_i32_0 : i32, i32, i32
  }
  func.func @transform_7(%arg0: i32, %arg1: i32, %arg2: i32) -> (i32, i32, i32, i32) {
    %c1_i32 = arith.constant 1 : i32
    %0 = arith.muli %arg0, %c1_i32 : i32
    %1 = arith.addi %0, %arg1 : i32
    %c0_i32 = arith.constant 0 : i32
    %c0_i32_0 = arith.constant 0 : i32
    %c0_i32_1 = arith.constant 0 : i32
    %c0_i32_2 = arith.constant 0 : i32
    return %1, %c0_i32, %c0_i32_0, %c0_i32_1 : i32, i32, i32, i32
  }
}

</mosaic_0001>

<bundles_post_ra>
// kernel: tpu_custom_call.1
= control target key start
LH: loop header
LB: loop body
LE: loop exit
PB: predicated region body
PF: predicated region fallthrough
CT: control target
= control target key end

     0   :  { %12 = vsyncpa [#allocation3], 0  ;;  %s1068_s0 = inlined_call_operand.hbm [shape: f32[2,2,128], index: 0, kind: input, shape index: {}]   ;;  %s1069_s1 = inlined_call_operand.hbm [shape: f32[2,2,128], index: 1, kind: input, shape index: {}]   ;;  %s1070_s2 = inlined_call_operand.hbm [shape: f32[2,4,2,128], index: 2, kind: input, shape index: {}]   ;;  %s1071_s3 = inlined_call_operand.hbm [shape: f32[2,4,2,128], index: 3, kind: input, shape index: {}]   ;;  %s1072_s4 = inlined_call_operand.vmem [shape: f32[2,2,128], index: 4, kind: input, shape index: {}]   ;;  %s1073_s5 = inlined_call_operand.vmem [shape: f32[2,2,128], index: 5, kind: input, shape index: {}]   ;;  %s1074_s6 = inlined_call_operand.hbm [shape: f32[2,2,128], index: 6, kind: input, shape index: {}]   ;;  %s1075_s7 = inlined_call_operand.hbm [shape: f32[1,3,2,128], index: 7, kind: output, shape index: {}]  }
   0x1   :  { %13 = vsyncpa [#allocation6], 0 }
   0x2   :  { %14 = vsyncpa [#allocation9], 0 }
   0x3   :  { %15 = vsyncpa [#allocation4], 0  ;;  %s758_s24 = smov [#allocation5]   ;;  %s759_s26 = smov [#allocation8]  }
   0x4   :  { %s43_s25 = sshll.u32 %s758_s24, 4  ;;  %s77_s27 = sshll.u32 %s759_s26, 4  ;;  %s44_s25 = int_to_ptr.vmem [resolvable:$true] %s43_s25  ;;  %s78_s27 = int_to_ptr.vmem [resolvable:$true] %s77_s27 }
   0x5   :  { %s638_s28 = scalar_lea.vmem %s44_s25, 64  ;;  %p643_p1 = scmp.lt.s32.totalorder %s44_s25, %s44_s25 }
   0x6   :  { %p639_p0 = scmp.ne.s32.totalorder %s44_s25, %s638_s28  ;;  %p644_p2 = scmp.lt.s32.totalorder %s638_s28, %s638_s28 }
   0x8   :  { %p645_p3 = por %p644_p2, %p643_p1 }
   0xa   :  { %p646_p4 = pnand %p645_p3, %p639_p0 }
   0xc   :  { %649 = shalt.err (!%p646_p4)
}
   0xd   :  { %s760_s29 = smov 32   ;;  %s761_s30 = smov 2  }
   0xe   :  { %49 = dma.hbm_to_vmem [thread:$0]  %s1069_s1, 64, %s44_s25, [#allocation6], %s760_s29, %s760_s29, %s761_s30  }
   0xf   :  { %s658_s10 = scalar_lea.vmem %s78_s27, 256  ;;  %p663_p6 = scmp.lt.s32.totalorder %s78_s27, %s78_s27 }
  0x10   :  { %p659_p5 = scmp.ne.s32.totalorder %s78_s27, %s658_s10  ;;  %p664_p7 = scmp.lt.s32.totalorder %s658_s10, %s658_s10 }
  0x12   :  { %p665_p8 = por %p664_p7, %p663_p6 }
  0x14   :  { %p666_p9 = pnand %p665_p8, %p659_p5 }
  0x16   :  { %669 = shalt.err (!%p666_p9)
}
  0x17   :  { %83 = dma.hbm_to_vmem [thread:$0]  %s1071_s3, 256, %s78_s27, [#allocation9], %s760_s29, %s760_s29, %s761_s30  }
  0x18   :  { %s762_s13 = smov [#allocation2]   ;;  %s763_s15 = smov [#allocation7]  }
  0x19   :  { %s26_s14 = sshll.u32 %s762_s13, 4  ;;  %s60_s16 = sshll.u32 %s763_s15, 4  ;;  %s27_s14 = int_to_ptr.vmem [resolvable:$true] %s26_s14  ;;  %s61_s16 = int_to_ptr.vmem [resolvable:$true] %s60_s16 }
  0x1a   :  { %s678_s1 = scalar_lea.vmem %s27_s14, 64  ;;  %p683_p11 = scmp.lt.s32.totalorder %s27_s14, %s27_s14 }
  0x1b   :  { %p679_p10 = scmp.ne.s32.totalorder %s27_s14, %s678_s1  ;;  %p684_p12 = scmp.lt.s32.totalorder %s678_s1, %s678_s1 }
  0x1d   :  { %p685_p13 = por %p684_p12, %p683_p11 }
  0x1f   :  { %p686_p0 = pnand %p685_p13, %p679_p10 }
  0x21   :  { %689 = shalt.err (!%p686_p0)
}
  0x22   :  { %32 = dma.hbm_to_vmem [thread:$0]  %s1068_s0, 64, %s27_s14, [#allocation3], %s760_s29, %s760_s29, %s761_s30  }
  0x23   :  { %s698_s3 = scalar_lea.vmem %s61_s16, 256  ;;  %p703_p2 = scmp.lt.s32.totalorder %s61_s16, %s61_s16 }
  0x24   :  { %p699_p1 = scmp.ne.s32.totalorder %s61_s16, %s698_s3  ;;  %p704_p3 = scmp.lt.s32.totalorder %s698_s3, %s698_s3 }
  0x26   :  { %p705_p4 = por %p704_p3, %p703_p2 }
  0x28   :  { %p706_p5 = pnand %p705_p4, %p699_p1 }
  0x2a   :  { %709 = shalt.err (!%p706_p5)
}
  0x2b   :  { %66 = dma.hbm_to_vmem [thread:$0]  %s1070_s2, 256, %s61_s16, [#allocation6], %s760_s29, %s760_s29, %s761_s30  }
  0x2c   :  { %s764_s21 = smov [#allocation10]  }
  0x2d   :  { %s118_s22 = sshll.u32 %s764_s21, 4  ;;  %s119_s22 = int_to_ptr.vmem [resolvable:$true] %s118_s22 }
  0x2e   :  { %s718_s23 = scalar_lea.vmem %s119_s22, 64  ;;  %p723_p7 = scmp.lt.s32.totalorder %s119_s22, %s119_s22 }
  0x2f   :  { %p719_p6 = scmp.ne.s32.totalorder %s119_s22, %s718_s23  ;;  %p724_p8 = scmp.lt.s32.totalorder %s718_s23, %s718_s23 }
  0x31   :  { %p725_p9 = por %p724_p8, %p723_p7 }
  0x33   :  { %p726_p10 = pnand %p725_p9, %p719_p6 }
  0x35   :  { %729 = shalt.err (!%p726_p10)
}
  0x36   :  { %124 = dma.hbm_to_vmem [thread:$0]  %s1074_s6, 64, %s119_s22, [#allocation9], %s760_s29, %s760_s29, %s761_s30  }
  0x37   :  { %750 = dma.done.wait [#allocation3], 64  }
  0x38   :  { %751 = vsyncadd [#allocation3], 4294967232 }
  0x39   :  { %752 = dma.done.wait [#allocation6], 320  }
  0x3a   :  { %753 = vsyncadd [#allocation6], 4294966976 }
  0x3b   :  { %754 = dma.done.wait [#allocation9], 320  }
  0x3c   :  { %755 = vsyncadd [#allocation9], 4294966976  ;;  %v765_v0 = vmov 0.0   ;;  %v197_v1 = vld [vmem:[#allocation2] sm:$0x3]  ;;  %vm510_vm0 = vcmask 1041408  }
  0x3d   :  { %194 = vst [vmem:[#allocation11] sm:$0x3] %v765_v0  ;;  %195 = vst [vmem:[#allocation11 + $0x2] sm:$0x3] %v765_v0  ;;  %v198_v2 = vld [vmem:[#allocation2 + $0x2] sm:$0x3]  ;;  %606 = vlog2.f32 %v197_v1 }
  0x3e   :  { %196 = vst [vmem:[#allocation11 + $0x4] sm:$0x3] %v765_v0  ;;  %608 = vlog2.f32 %v198_v2  ;;  %v213_v3 = vsub.f32 1.0, %v197_v1  ;;  %v214_v4 = vsub.f32 1.0, %v198_v2  ;;  %v203_v5 = vld [vmem:[%s1072_s4] sm:$0x3] }
  0x3f   :  { %v205_v6 = vld [vmem:[%s1073_s5] sm:$0x3]  ;;  %v199_v12 = vld [vmem:[#allocation5] sm:$0x3]  ;;  %v200_v15 = vld [vmem:[#allocation5 + $0x2] sm:$0x3] }
  0x40   :  { %610 = vlog2.f32 %v213_v3  ;;  %v849_v7 = vsub.f32 %v203_v5, %v205_v6  ;;  %v204_v20 = vld [vmem:[%s1072_s4 + $0x2] sm:$0x3]  ;;  %v223_v26 = vsub.f32 1.0, %v199_v12  ;;  %v224_v28 = vsub.f32 1.0, %v200_v15  ;;  %v866_v44 = vld [vmem:[#allocation10] sm:$0x3] }
  0x41   :  { %612 = vlog2.f32 %v214_v4  ;;  %v206_v21 = vld [vmem:[%s1073_s5 + $0x2] sm:$0x3]  ;;  %v766_v47 = vmov 683565275   ;;  %v767_v49 = vmov 2475754826  }
  0x42   :  { %v293_v8 = vand.u32 2147483647, %v849_v7  ;;  %v296_v9 = vand.u32 2139095040, %v849_v7  ;;  %v861_v32 = vsub.f32 %v204_v20, %v206_v21  ;;  %v870_v51 = vld [vmem:[#allocation10 + $0x2] sm:$0x3]  ;;  %vm295_vm14 = vcmp.lt.s32.totalorder %v849_v7, 0 }
  0x43   :  { %v768_v53 = vmov 2131351028   ;;  %v769_v55 = vmov 2102212464   ;;  %v770_v57 = vmov 920167782  }
  0x44   :  { %v297_v14 = vshrl.u32 %v296_v9, 23  ;;  %v300_v17 = vand.u32 8388607, %v293_v8  ;;  %v399_v43 = vand.u32 2139095040, %v861_v32  ;;  %v771_v2 = vmov 1326507024  }
  0x45   :  { %vm1021_vm15 = vcmp.le.f32.partialorder %v293_v8, 0.7853982  ;;  %s772_s4 = smov [#allocation11]  }
  0x46   :  { %v575_v22 = vadd.s32 4294967169, %v297_v14  ;;  %v301_v33 = vor.u32 8388608, %v300_v17  ;;  %s539_s5 = sshll.u32 %s772_s4, 4  ;;  %s540_s5 = int_to_ptr.vmem [resolvable:$true] %s539_s5 }
  0x47   :  { %s730_s10 = scalar_lea.vmem %s540_s5, 96  ;;  %p735_p12 = scmp.lt.s32.totalorder %s540_s5, %s540_s5 }
  0x48   :  { %v303_v29 = vadd.s32 1, %v575_v22  ;;  %v863_v42 = vshll.u32 %v301_v33, 8  ;;  %p731_p11 = scmp.ne.s32.totalorder %s540_s5, %s730_s10  ;;  %p736_p13 = scmp.lt.s32.totalorder %s730_s10, %s730_s10 }
  0x4a   :  { %v607_v10 = vpop.eup %606  ;;  %vm304_vm1 = vcmp.gt.s32.totalorder %v303_v29, 0  ;;  %p737_p0 = por %p736_p13, %p735_p12 }
  0x4b   :  { %v609_v11 = vpop.eup %608  ;;  %v208_v13 = vmul.f32 0.6931472, %v607_v10  ;;  %v305_v37 = vsel %vm304_vm1, %v303_v29, 0  ;;  %v525_v29 = vsel %vm510_vm0, %v866_v44, 0.0 }
  0x4c   :  { %v210_v16 = vmul.f32 0.6931472, %v609_v11  ;;  %v307_v39 = vand.u32 31, %v305_v37  ;;  %v306_v41 = vshrl.u32 %v305_v37, 5  ;;  %p738_p1 = pnand %p737_p0, %p731_p11 }
  0x4d   :  { %v611_v18 = vpop.eup %610  ;;  %v211_v19 = vmax.f32 %v208_v13, -100.0  ;;  %v509_v13 = vld [vmem:[#allocation11] sm:$0x3] }
  0x4e   :  { %v613_v23 = vpop.eup %612  ;;  %v212_v24 = vmax.f32 %v210_v16, -100.0  ;;  %v216_v25 = vmul.f32 0.6931472, %v611_v18  ;;  %v308_v46 = vsub.s32 32, %v307_v39  ;;  %v310_v48 = vshll.u32 %v766_v47, %v307_v39 }
  0x4f   :  { %v218_v27 = vmul.f32 0.6931472, %v613_v23  ;;  %v221_v31 = vmul.f32 %v211_v19, %v199_v12  ;;  %v313_v50 = vshll.u32 %v767_v49, %v307_v39  ;;  %v316_v54 = vshll.u32 %v768_v53, %v307_v39 }
  0x50   :  { %v219_v30 = vmax.f32 %v216_v25, -100.0  ;;  %v222_v35 = vmul.f32 %v212_v24, %v200_v15  ;;  %v319_v56 = vshll.u32 %v769_v55, %v307_v39  ;;  %v322_v58 = vshll.u32 %v770_v57, %v307_v39  ;;  %v524_v39 = vld [vmem:[#allocation11 + $0x4] sm:$0x3] }
  0x51   :  { %v220_v34 = vmax.f32 %v218_v27, -100.0  ;;  %v309_v60 = vshrl.u32 %v766_v47, %v308_v46  ;;  %v311_v61 = vshrl.u32 %v767_v49, %v308_v46  ;;  %v314_v62 = vshrl.u32 %v768_v53, %v308_v46 }
  0x52   :  { %v225_v36 = vmul.f32 %v223_v26, %v219_v30  ;;  %v317_v0 = vshrl.u32 %v769_v55, %v308_v46  ;;  %v320_v1 = vshrl.u32 %v770_v57, %v308_v46  ;;  %v323_v3 = vshrl.u32 %v771_v2, %v308_v46 }
  0x53   :  { %v226_v38 = vmul.f32 %v224_v28, %v220_v34  ;;  %v312_v5 = vor.u32 %v311_v61, %v310_v48  ;;  %v315_v6 = vor.u32 %v314_v62, %v313_v50  ;;  %vm325_vm2 = vcmp.lt.s32.totalorder %v306_v41, 1  ;;  %v909_v48 = vld [vmem:[#allocation7 + $0x4] sm:$0x3]  ;;  %v911_v50 = vld [vmem:[#allocation7 + $0x6] sm:$0x3] }
  0x54   :  { %v227_v40 = vadd.f32 %v225_v36, %v221_v31  ;;  %v318_v10 = vor.u32 %v317_v0, %v316_v54  ;;  %v321_v11 = vor.u32 %v320_v1, %v319_v56  ;;  %v324_v12 = vor.u32 %v323_v3, %v322_v58  ;;  %v917_v54 = vld [vmem:[#allocation7 + $0xc] sm:$0x3] }
  0x55   :  { %v228_v45 = vadd.f32 %v226_v38, %v222_v35  ;;  %vm327_vm3 = vcmp.lt.s32.totalorder %v306_v41, 3  ;;  %vm328_vm4 = vcmp.lt.s32.totalorder %v306_v41, 4  ;;  %v400_v15 = vshrl.u32 %v399_v43, 23  ;;  %v898_v35 = vld [vmem:[#allocation7] sm:$0x3] }
  0x56   :  { %v229_v52 = vsub.f32 0.0, %v227_v40  ;;  %vm326_vm5 = vcmp.lt.s32.totalorder %v306_v41, 2  ;;  %v330_v17 = vsel %vm328_vm4, %v318_v10, 2102212464  ;;  %v333_v18 = vsel %vm325_vm2, %v312_v5, %v315_v6  ;;  %v906_v40 = vld [vmem:[#allocation7 + $0x2] sm:$0x3] }
  0x57   :  { %v230_v59 = vsub.f32 0.0, %v228_v45  ;;  %v329_v19 = vsel %vm325_vm2, %v309_v60, %v312_v5  ;;  %v334_v20 = vsel %vm328_vm4, %v321_v11, 920167782  ;;  %v337_v21 = vsel %vm325_vm2, %v315_v6, %v318_v10  ;;  %v915_v41 = vld [vmem:[#allocation7 + $0xa] sm:$0x3] }
  0x58   :  { %v505_v63 = vmul.f32 %v229_v52, %v866_v44  ;;  %v338_v22 = vsel %vm328_vm4, %v324_v12, 1326507024  ;;  %v331_v24 = vsel %vm327_vm3, %v315_v6, %v330_v17  ;;  %v335_v25 = vsel %vm327_vm3, %v318_v10, %v334_v20  ;;  %v913_v52 = vld [vmem:[#allocation7 + $0x8] sm:$0x3]  ;;  %v924_v60 = vld [vmem:[#allocation8] sm:$0x3] }
  0x59   :  { %v506_v4 = vmul.f32 %v230_v59, %v870_v51  ;;  %v339_v26 = vsel %vm327_vm3, %v321_v11, %v338_v22  ;;  %v336_v27 = vsel %vm326_vm5, %v333_v18, %v335_v25  ;;  %v526_v30 = vsel %vm510_vm0, %v870_v51, 0.0  ;;  %v922_v59 = vld [vmem:[#allocation7 + $0xe] sm:$0x3] }
  0x5a   :  { %v511_v9 = vsel %vm510_vm0, %v505_v63, 0.0  ;;  %v340_v28 = vsel %vm326_vm5, %v337_v21, %v339_v26  ;;  %v579_v34 = vadd.s32 4294967169, %v400_v15  ;;  %v332_v36 = vsel %vm326_vm5, %v329_v19, %v331_v24  ;;  %v927_v63 = vld [vmem:[#allocation8 + $0x2] sm:$0x3] }
  0x5b   :  { %v512_v14 = vsel %vm510_vm0, %v506_v4, 0.0  ;;  %v895_v31 = vmul.u32.u64.low %v863_v42, %v340_v28  ;;  %v896_v33 = vmul.u32.u64.high %v863_v42, %v340_v28, %v895_v31  ;;  %v396_v43 = vand.u32 2147483647, %v861_v32  ;;  %v241_v28 = vld [vmem:[#allocation8 + $0x4] sm:$0x3] }
  0x5c   :  { %v513_v16 = vadd.f32 %v512_v14, %v511_v9  ;;  %v902_v37 = vmul.u32.u64.low %v863_v42, %v336_v27  ;;  %v903_v38 = vmul.u32.u64.high %v863_v42, %v336_v27, %v902_v37  ;;  %v406_v45 = vadd.s32 1, %v579_v34 }
  0x5d   :  { %v527_v46 = vadd.f32 %v526_v30, %v525_v29  ;;  %v348_v56 = vmul.u32 %v863_v42, %v332_v36  ;;  %v253_v0 = vadd.f32 %v906_v40, %v898_v35  ;;  %v403_v42 = vand.u32 8388607, %v396_v43  ;;  %v242_v29 = vld [vmem:[#allocation8 + $0x6] sm:$0x3] }
  0x5e   :  { %v514_v23 = vadd.f32 %v513_v16, %v509_v13  ;;  %vm350_vm6 = vc.u32 %v896_v33, %v902_v37  ;;  %vm407_vm7 = vcmp.gt.s32.totalorder %v406_v45, 0  ;;  %v351_v61 = vadd.s32 1, %v903_v38 }
  0x5f   :  { %v528_v58 = vadd.f32 %v527_v46, %v524_v39  ;;  %v408_v62 = vsel %vm407_vm7, %v406_v45, 0  ;;  %v935_v3 = vadd.f32 %v915_v41, %v913_v52  ;;  %v255_v4 = vadd.f32 %v911_v50, %v909_v48 }
  0x60   :  { %515 = vst [vmem:[#allocation11] sm:$0x3] %v514_v23  ;;  %v410_v1 = vand.u32 31, %v408_v62  ;;  %v352_v5 = vsel %vm350_vm6, %v351_v61, %v903_v38  ;;  %v940_v6 = vshrl.u32 %v408_v62, 5  ;;  %v247_v13 = vadd.f32 %v927_v63, %v924_v60  ;;  %v243_v38 = vld [vmem:[#allocation8 + $0x8] sm:$0x3] }
  0x61   :  { %529 = vst [vmem:[#allocation11 + $0x4] sm:$0x3] %v528_v58  ;;  %v353_v9 = vadd.s32 %v352_v5, %v348_v56  ;;  %v948_v14 = vadd.f32 %v922_v59, %v917_v54  ;;  %v404_v18 = vor.u32 8388608, %v403_v42  ;;  %v257_v30 = vmul.f32 %v255_v4, %v253_v0  ;;  %v244_v56 = vld [vmem:[#allocation8 + $0xa] sm:$0x3] }
  0x62   :  { %v411_v10 = vsub.s32 32, %v410_v1  ;;  %v413_v11 = vshll.u32 %v766_v47, %v410_v1  ;;  %v416_v12 = vshll.u32 %v767_v49, %v410_v1  ;;  %v419_v15 = vshll.u32 %v768_v53, %v410_v1  ;;  %v245_v58 = vld [vmem:[#allocation8 + $0xc] sm:$0x3]  ;;  %v246_v61 = vld [vmem:[#allocation8 + $0xe] sm:$0x3] }
  0x63   :  { %v422_v16 = vshll.u32 %v769_v55, %v410_v1  ;;  %v354_v17 = vadd.s32 536870912, %v353_v9  ;;  %v425_v23 = vshll.u32 %v770_v57, %v410_v1  ;;  %vm428_vm8 = vcmp.lt.s32.totalorder %v940_v6, 1 }
  0x64   :  { %v414_v19 = vshrl.u32 %v767_v49, %v411_v10  ;;  %v417_v20 = vshrl.u32 %v768_v53, %v411_v10  ;;  %v420_v21 = vshrl.u32 %v769_v55, %v411_v10  ;;  %v423_v22 = vshrl.u32 %v770_v57, %v411_v10 }
  0x65   :  { %v426_v24 = vshrl.u32 %v771_v2, %v411_v10  ;;  %v958_v25 = vshrl.u32 %v354_v17, 30  ;;  %vm431_vm9 = vcmp.lt.s32.totalorder %v940_v6, 4  ;;  %v412_v55 = vshrl.u32 %v766_v47, %v411_v10 }
  0x66   :  { %v415_v26 = vor.u32 %v414_v19, %v413_v11  ;;  %v418_v27 = vor.u32 %v417_v20, %v416_v12  ;;  %v421_v49 = vor.u32 %v420_v21, %v419_v15  ;;  %v424_v31 = vor.u32 %v423_v22, %v422_v16 }
  0x67   :  { %v356_v53 = vshll.u32 %v958_v25, 30  ;;  %vm430_vm10 = vcmp.lt.s32.totalorder %v940_v6, 3  ;;  %v444_v57 = vshll.u32 %v404_v18, 8  ;;  %v427_v2 = vor.u32 %v426_v24, %v425_v23 }
  0x68   :  { %vm429_vm11 = vcmp.lt.s32.totalorder %v940_v6, 2  ;;  %v436_v34 = vsel %vm428_vm8, %v415_v26, %v418_v27  ;;  %v437_v36 = vsel %vm431_vm9, %v424_v31, 920167782  ;;  %v249_v39 = vadd.f32 %v242_v29, %v241_v28 }
  0x69   :  { %v259_v45 = vmin.f32 %v924_v60, %v898_v35  ;;  %v357_v46 = vsub.s32 %v353_v9, %v356_v53  ;;  %v433_v47 = vsel %vm431_vm9, %v421_v49, 2102212464  ;;  %v261_v62 = vmin.f32 %v927_v63, %v906_v40 }
  0x6a   :  { %v265_v0 = vmin.f32 %v241_v28, %v909_v48  ;;  %v267_v42 = vmin.f32 %v242_v29, %v911_v50  ;;  %v438_v1 = vsel %vm430_vm10, %v421_v49, %v437_v36  ;;  %v432_v35 = vsel %vm428_vm8, %v412_v55, %v415_v26 }
  0x6b   :  { %v359_v4 = vsub.s32 0, %v357_v46  ;;  %v439_v60 = vsel %vm429_vm11, %v436_v34, %v438_v1  ;;  %v440_v5 = vsel %vm428_vm8, %v418_v27, %v421_v49  ;;  %v434_v40 = vsel %vm430_vm10, %v418_v27, %v433_v47 }
  0x6c   :  { %v441_v48 = vsel %vm431_vm9, %v427_v2, 1326507024  ;;  %v990_v50 = vmul.u32.u64.low %v444_v57, %v439_v60  ;;  %v991_v63 = vmul.u32.u64.high %v444_v57, %v439_v60, %v990_v50  ;;  %v248_v9 = vadd.f32 %v244_v56, %v243_v38 }
  0x6d   :  { %v250_v10 = vadd.f32 %v246_v61, %v245_v58  ;;  %v260_v11 = vmin.f32 %v243_v38, %v913_v52  ;;  %v576_v12 = vmin.u32 %v359_v4, %v357_v46  ;;  %v251_v15 = vmul.f32 %v249_v39, %v247_v13 }
  0x6e   :  { %v262_v16 = vmin.f32 %v244_v56, %v915_v41  ;;  %v263_v17 = vadd.f32 %v261_v62, %v259_v45  ;;  %v442_v18 = vsel %vm430_vm10, %v424_v31, %v441_v48  ;;  %v266_v19 = vmin.f32 %v245_v58, %v917_v54 }
  0x6f   :  { %v361_v20 = vclz %v576_v12  ;;  %v435_v21 = vsel %vm429_vm11, %v432_v35, %v434_v40  ;;  %v443_v22 = vsel %vm429_vm11, %v440_v5, %v442_v18  ;;  %v268_v23 = vmin.f32 %v246_v61, %v922_v59 }
  0x70   :  { %v269_v52 = vadd.f32 %v267_v42, %v265_v0  ;;  %v1004_v24 = vmul.u32.u64.low %v444_v57, %v443_v22  ;;  %v1005_v13 = vmul.u32.u64.high %v444_v57, %v443_v22, %v1004_v24  ;;  %v454_v26 = vadd.s32 1, %v991_v63 }
  0x71   :  { %v577_v41 = vadd.s32 4294967294, %v361_v20  ;;  %v252_v27 = vmul.f32 %v250_v10, %v248_v9  ;;  %v258_v54 = vmul.f32 %v948_v14, %v935_v3  ;;  %v451_v28 = vmul.u32 %v444_v57, %v435_v21 }
  0x72   :  { %v264_v29 = vadd.f32 %v262_v16, %v260_v11  ;;  %v275_v49 = vadd.f32 %v257_v30, %v251_v15  ;;  %v349_v6 = vadd.s32 %v902_v37, %v896_v33  ;;  %v270_v31 = vadd.f32 %v268_v23, %v266_v19 }
  0x73   :  { %vm578_vm12 = vcmp.lt.s32.totalorder %v577_v41, 0  ;;  %v271_v59 = vmul.f32 %v269_v52, %v263_v17  ;;  %vm453_vm13 = vc.u32 %v1005_v13, %v990_v50  ;;  %v276_v45 = vadd.f32 %v258_v54, %v252_v27 }
  0x74   :  { %v364_v53 = vsel %vm578_vm12, 0, %v577_v41  ;;  %v455_v36 = vsel %vm453_vm13, %v454_v26, %v991_v63  ;;  %v272_v39 = vmul.f32 %v270_v31, %v264_v29  ;;  %v452_v8 = vadd.s32 %v990_v50, %v1005_v13 }
  0x75   :  { %v365_v55 = vsub.s32 32, %v364_v53  ;;  %v366_v2 = vshll.u32 %v357_v46, %v364_v53  ;;  %v369_v34 = vsub.s32 4294967266, %v364_v53  ;;  %v456_v38 = vadd.s32 %v455_v36, %v451_v28 }
  0x76   :  { %v277_v57 = vsub.f32 %v275_v49, %v271_v59  ;;  %v278_v46 = vsub.f32 %v276_v45, %v272_v39  ;;  %v379_v12 = vsub.s32 4, %v958_v25  ;;  %v273_v18 = vadd.f32 1.0, %v271_v59 }
  0x77   :  { %v367_v3 = vshrl.u32 %v349_v6, %v365_v55  ;;  %v370_v14 = vadd.s32 127, %v369_v34  ;;  %v457_v30 = vadd.s32 536870912, %v456_v38  ;;  %v274_v13 = vadd.f32 1.0, %v272_v39 }
  0x78   :  { %v279_v61 = vadd.f32 1.0, %v277_v57  ;;  %v280_v35 = vadd.f32 1.0, %v278_v46  ;;  %v380_v22 = vsel %vm295_vm14, %v379_v12, %v958_v25  ;;  %vm398_vm2 = vcmp.lt.s32.totalorder %v861_v32, 0 }
  0x79   :  { %v368_v33 = vor.u32 %v367_v3, %v366_v2  ;;  %v371_v37 = vshll.u32 %v370_v14, 23  ;;  %v1015_v47 = vshrl.u32 %v457_v30, 30  ;;  %v382_v26 = vsel %vm1021_vm15, 0, %v380_v22 }
  0x7a   :  { %614 = vrcp.f32 %v279_v61  ;;  %v386_v49 = vand.u32 3, %v382_v26  ;;  %vm1041_vm3 = vcmp.le.f32.partialorder %v396_v43, 0.7853982  ;;  %vm385_vm7 = vweird.f32 %v849_v7 }
  0x7b   :  { %v372_v56 = vor.u32 4788187, %v371_v37  ;;  %v375_v58 = vcvt.s32.f32 %v368_v33  ;;  %v459_v62 = vshll.u32 %v1015_v47, 30  ;;  %616 = vrcp.f32 %v280_v35 }
  0x7c   :  { %vm388_vm4 = vcmp.eq.s32.totalorder %v386_v49, 0  ;;  %vm391_vm5 = vcmp.eq.s32.totalorder %v386_v49, 2  ;;  %v482_v34 = vsub.s32 4, %v1015_v47  ;;  %vm387_vm6 = vcmp.lt.s32.totalorder %v386_v49, 2 }
  0x7d   :  { %v373_v0 = vand.u32 2147483647, %v372_v56  ;;  %v460_v42 = vsub.s32 %v456_v38, %v459_v62  ;;  %vm488_vm11 = vweird.f32 %v861_v32 }
  0x7e   :  { %v483_v3 = vsel %vm398_vm2, %v482_v34, %v1015_v47 }
  0x7f   :  { %v376_v1 = vmul.f32 %v375_v58, %v373_v0  ;;  %v462_v4 = vsub.s32 0, %v460_v42  ;;  %v485_v57 = vsel %vm1041_vm3, 0, %v483_v3 }
  0x80   :  { %v489_v45 = vand.u32 3, %v485_v57 }
  0x81   :  { %v377_v5 = vxor.u32 2147483648, %v376_v1  ;;  %v580_v40 = vmin.u32 %v462_v4, %v460_v42 }
  0x82   :  { %vm494_vm8 = vcmp.eq.s32.totalorder %v489_v45, 2  ;;  %vm491_vm9 = vcmp.eq.s32.totalorder %v489_v45, 0  ;;  %vm490_vm10 = vcmp.lt.s32.totalorder %v489_v45, 2 }
  0x83   :  { %v378_v48 = vsel %vm295_vm14, %v377_v5, %v376_v1  ;;  %v464_v9 = vclz %v580_v40 }
  0x84   :  { %v381_v63 = vsel %vm1021_vm15, %v849_v7, %v378_v48 }
  0x85   :  { %618 = vcosq.f32 %v381_v63  ;;  %v581_v10 = vadd.s32 4294967294, %v464_v9 }
  0x86   :  { %620 = vsinq.f32 %v381_v63 }
  0x87   :  { %vm582_vm1 = vcmp.lt.s32.totalorder %v581_v10, 0  ;;  %v615_v21 = vpop.eup %614 }
  0x88   :  { %v467_v11 = vsel %vm582_vm1, 0, %v581_v10  ;;  %v282_v24 = vmul.f32 %v615_v21, %v273_v18  ;;  %v617_v27 = vpop.eup %616 }
  0x89   :  { %v468_v15 = vsub.s32 32, %v467_v11  ;;  %v469_v16 = vshll.u32 %v460_v42, %v467_v11  ;;  %v472_v17 = vsub.s32 4294967266, %v467_v11  ;;  %v284_v31 = vmul.f32 %v617_v27, %v274_v13  ;;  %v517_v11 = vld [vmem:[#allocation11 + $0x2] sm:$0x3] }
  0x8a   :  { %622 = vlog2.f32 %v282_v24 }
  0x8b   :  { %v470_v19 = vshrl.u32 %v452_v8, %v468_v15  ;;  %v473_v20 = vadd.s32 127, %v472_v17  ;;  %624 = vlog2.f32 %v284_v31 }
  0x8d   :  { %v471_v23 = vor.u32 %v470_v19, %v469_v16  ;;  %v474_v52 = vshll.u32 %v473_v20, 23 }
  0x8f   :  { %v475_v41 = vor.u32 4788187, %v474_v52  ;;  %v478_v50 = vcvt.s32.f32 %v471_v23 }
  0x91   :  { %v476_v54 = vand.u32 2147483647, %v475_v41 }
  0x92   :  { %v619_v28 = vpop.eup %618 }
  0x93   :  { %v621_v29 = vpop.eup %620  ;;  %v479_v6 = vmul.f32 %v478_v50, %v476_v54  ;;  %v392_v55 = vxor.u32 2147483648, %v619_v28 }
  0x94   :  { %v389_v53 = vxor.u32 2147483648, %v621_v29 }
  0x95   :  { %v480_v59 = vxor.u32 2147483648, %v479_v6  ;;  %v393_v38 = vsel %vm391_vm5, %v392_v55, %v621_v29 }
  0x96   :  { %v390_v43 = vsel %vm388_vm4, %v619_v28, %v389_v53 }
  0x97   :  { %v481_v2 = vsel %vm398_vm2, %v480_v59, %v479_v6  ;;  %v394_v14 = vsel %vm387_vm6, %v390_v43, %v393_v38  ;;  %v623_v30 = vpop.eup %622 }
  0x98   :  { %v484_v36 = vsel %vm1041_vm3, %v861_v32, %v481_v2  ;;  %v395_v39 = vsel %vm385_vm7, nan, %v394_v14  ;;  %v286_v33 = vmul.f32 0.6931472, %v623_v30  ;;  %v625_v56 = vpop.eup %624 }
  0x99   :  { %626 = vcosq.f32 %v484_v36  ;;  %v499_v37 = vsub.f32 1.0, %v395_v39  ;;  %v288_v7 = vmul.f32 0.6931472, %v625_v56 }
  0x9a   :  { %628 = vsinq.f32 %v484_v36  ;;  %v289_v62 = vsub.f32 0.0, %v286_v33 }
  0x9b   :  { %v501_v0 = vmul.f32 10.0, %v499_v37  ;;  %v290_v5 = vsub.f32 0.0, %v288_v7 }
  0x9d   :  { %v503_v35 = vadd.f32 %v501_v0, %v289_v62 }
  0x9f   :  { %v507_v63 = vmul.f32 %v503_v35, %v866_v44 }
  0xa1   :  { %v518_v8 = vsel %vm510_vm0, %v507_v63, 0.0 }
  0xa6   :  { %v627_v58 = vpop.eup %626 }
  0xa7   :  { %v629_v61 = vpop.eup %628  ;;  %v495_v46 = vxor.u32 2147483648, %v627_v58 }
  0xa8   :  { %v492_v47 = vxor.u32 2147483648, %v629_v61 }
  0xa9   :  { %v496_v42 = vsel %vm494_vm8, %v495_v46, %v629_v61 }
  0xaa   :  { %v493_v1 = vsel %vm491_vm9, %v627_v58, %v492_v47 }
  0xab   :  { %v497_v4 = vsel %vm490_vm10, %v493_v1, %v496_v42 }
  0xac   :  { %v498_v60 = vsel %vm488_vm11, nan, %v497_v4 }
  0xad   :  { %v500_v40 = vsub.f32 1.0, %v498_v60 }
  0xaf   :  { %v502_v48 = vmul.f32 10.0, %v500_v40 }
  0xb1   :  { %v504_v9 = vadd.f32 %v502_v48, %v290_v5 }
  0xb3   :  { %v508_v10 = vmul.f32 %v504_v9, %v870_v51 }
  0xb5   :  { %v519_v12 = vsel %vm510_vm0, %v508_v10, 0.0 }
  0xb6   :  { %v520_v32 = vadd.f32 %v519_v12, %v518_v8 }
  0xb8   :  { %v521_v15 = vadd.f32 %v520_v32, %v517_v11 }
  0xba   :  { %522 = vst [vmem:[#allocation11 + $0x2] sm:$0x3] %v521_v15 }
  0xbb   :  { %741 = shalt.err (!%p738_p1)
}
  0xbc   :  { %545 = dma.vmem_to_hbm [thread:$0]  %s540_s5, 96, %s1075_s7, [#allocation4], %s760_s29, %s760_s29, %s761_s30  }
  0xbd   :  { %756 = dma.done.wait [#allocation4], 96  }
  0xbe   :  { %757 = vsyncadd [#allocation4], 4294967200 }
  0xbf   :  { %549 = vsyncpa [#allocation3], 1 }
  0xc0   :  { %550 = vsyncpa [#allocation6], 1 }
  0xc1   :  { %551 = vsyncpa [#allocation9], 1 }
  0xc2   :  { %552 = vsyncpa [#allocation4], 1 }

</bundles_post_ra>
